<compile_context>
chip_gen: v5e
topology: v5e:2x2
jax: 0.10.0
libtpu: 0.0.40
codegen_flags: <defaults>
</compile_context>

<pallas_src>
import functools

import numpy as np
import jax
import jax.numpy as jnp
from jax import lax
from jax.experimental import pallas as pl
from jax.experimental.pallas import tpu as pltpu


_TARGET_BLOCK_ELEMS = 1 << 20     # ~4 MiB per f32 input block
_MAX_LANE_BLOCK = 128 * 1024      # keep 8-row blocks <= ~4 MiB


def _cdiv(a, b):
    return -(-a // b)


def _make_kernel(B, L, bB, bC, GR, GC):
    row_tail = (B % bB) != 0
    col_tail = (L % bC) != 0

    def kernel(q_ref, p_ref, g_ref, out_ref, accd_ref, accm_ref):
        i = pl.program_id(0)   # row-block axis ("parallel" -> v7x megacore)
        j = pl.program_id(1)   # lane-block axis ("arbitrary" reduction)

        @pl.when(j == 0)
        def _init():
            accd_ref[...] = jnp.zeros_like(accd_ref)
            accm_ref[...] = jnp.zeros_like(accm_ref)

        p = p_ref[...].astype(jnp.float32)          # (bB, bC)
        g = g_ref[...].astype(jnp.float32)
        d = g - p

        def accumulate(dd):
            # Per-lane column sums; quantile weights applied only at finalize.
            accd_ref[...] += jnp.sum(dd, axis=0, keepdims=True)
            accm_ref[...] += jnp.sum(jnp.minimum(dd, 0.0), axis=0, keepdims=True)

        if row_tail or col_tail:
            # Only the last row/lane blocks can contain out-of-bounds garbage;
            # interior blocks take the mask-free fast path.
            preds = []
            if row_tail:
                preds.append(i == GR - 1)
            if col_tail:
                preds.append(j == GC - 1)
            on_tail = preds[0]
            for pr in preds[1:]:
                on_tail = jnp.logical_or(on_tail, pr)

            @pl.when(on_tail)
            def _masked():
                valid = None
                if row_tail:
                    r = lax.broadcasted_iota(jnp.int32, d.shape, 0)
                    valid = (i * bB + r) < B
                if col_tail:
                    c = lax.broadcasted_iota(jnp.int32, d.shape, 1)
                    vc = (j * bC + c) < L
                    valid = vc if valid is None else jnp.logical_and(valid, vc)
                accumulate(jnp.where(valid, d, 0.0))

            @pl.when(jnp.logical_not(on_tail))
            def _plain():
                accumulate(d)
        else:
            accumulate(d)

        @pl.when(j == GC - 1)
        def _finalize():
            # sum(q*relu(d) + (1-q)*relu(-d)) == sum(q*d - min(d,0))
            #                                 == q_row . colsum(d) - sum(colsum(min(d,0)))
            partial = jnp.sum(q_ref[...] * accd_ref[...] - accm_ref[...])
            out_ref[...] = jnp.full(out_ref.shape, partial, dtype=out_ref.dtype)

    return kernel


@functools.partial(jax.jit, static_argnames=("quantiles", "row_block", "lane_block"))
def quantile_loss(pred, gt, quantiles, *, row_block=None, lane_block=None):
    """pred, gt: [B, T, Q] (f32 or bf16); quantiles: tuple of Q floats in (0,1)."""
    quantiles = tuple(float(q) for q in quantiles)
    assert all(0.0 < q < 1.0 for q in quantiles)
    B, T, Q = pred.shape
    assert gt.shape == pred.shape and Q == len(quantiles)
    L = T * Q

    # Free, layout-preserving reshape: big T*Q axis on lanes, B on sublanes.
    p2 = pred.reshape(B, L)
    g2 = gt.reshape(B, L)

    # ---- lane (last-dim) block: full extent, or a multiple of Q*128 ----
    lane_align = Q * 128
    if lane_block is not None:
        bC = min(int(lane_block), L)
        if bC < L:
            assert bC % lane_align == 0, "lane_block must be a multiple of Q*128"
    elif L <= _MAX_LANE_BLOCK:
        bC = L
    else:
        bC = (_MAX_LANE_BLOCK // lane_align) * lane_align
    GC = _cdiv(L, bC)

    # ---- row (sublane) block ----
    rows_budget = max(8, ((_TARGET_BLOCK_ELEMS // bC) // 8) * 8)
    if row_block is not None:
        bB = min(int(row_block), B)
        if bB < B:
            assert bB % 8 == 0, "row_block must be a multiple of 8"
    elif B > rows_budget:
        bB = rows_budget
    elif B >= 16 and B * L >= (1 << 21):
        # Big enough to matter: force >=2 row blocks so the "parallel" axis can
        # be split across v7x's two TensorCores.
        bB = ((_cdiv(B, 2) + 7) // 8) * 8
    else:
        bB = B
    GR = _cdiv(B, bB)

    # Per-lane quantile weights; identical in every block since bC % Q == 0.
    assert bC % Q == 0
    qrow = jnp.asarray(
        np.tile(np.asarray(quantiles, np.float32), bC // Q).reshape(1, bC))

    kernel = _make_kernel(B, L, bB, bC, GR, GC)

    out = pl.pallas_call(
        kernel,
        out_shape=jax.ShapeDtypeStruct((GR, 8, 128), jnp.float32),
        grid_spec=pltpu.PrefetchScalarGridSpec(
            num_scalar_prefetch=0,
            grid=(GR, GC),
            in_specs=[
                pl.BlockSpec((1, bC), lambda i, j: (0, 0)),     # quantile row
                pl.BlockSpec((bB, bC), lambda i, j: (i, j)),    # pred
                pl.BlockSpec((bB, bC), lambda i, j: (i, j)),    # gt
            ],
            out_specs=pl.BlockSpec((1, 8, 128), lambda i, j: (i, 0, 0)),
            scratch_shapes=[
                pltpu.VMEM((1, bC), jnp.float32),   # column sums of d
                pltpu.VMEM((1, bC), jnp.float32),   # column sums of min(d, 0)
            ],
        ),
        compiler_params=pltpu.CompilerParams(
            dimension_semantics=("parallel", "arbitrary"),
            vmem_limit_bytes=32 * 1024 * 1024,
        ),
    )(qrow, p2, g2)

    partials = out[:, 0, 0]                       # one partial per row block
    return jnp.sum(partials) * (1.0 / float(B * T))


def _reference(pred, gt, quantiles):
    # Pure-JAX port of the PyTorch forward for verification.
    losses = []
    for i, q in enumerate(quantiles):
        delta = gt[:, :, i] - pred[:, :, i]
        l = q * jnp.maximum(delta, 0.0) + (1.0 - q) * jnp.maximum(-delta, 0.0)
        losses.append(l[:, None, :])              # unsqueeze(1)
    losses = jnp.concatenate(losses, axis=1)      # (B, Q, T)
    return jnp.mean(jnp.sum(losses, axis=1))


if __name__ == "__main__":
    quantiles = (0.1, 0.5, 0.9)
    Q = len(quantiles)

    # Test 1: tiny single-block case (default heuristics, grid (1,1)).
    B, T = 2, 8
    k1, k2 = jax.random.split(jax.random.PRNGKey(0))
    pred = jax.random.normal(k1, (B, T, Q), dtype=jnp.float32)
    gt = jax.random.normal(k2, (B, T, Q), dtype=jnp.float32)
    out = jax.block_until_ready(quantile_loss(pred, gt, quantiles))
    ref = _reference(pred, gt, quantiles)
    assert jnp.allclose(out, ref, rtol=1e-5, atol=1e-5), (out, ref)

    # Test 2: multi-block grid with ragged row AND lane tails (masking path,
    # parallel row axis, multi-step accumulation over lane blocks).
    B2, T2 = 20, 200                 # L=600 -> lane blocks of 384 (tail 216)
    k3, k4 = jax.random.split(jax.random.PRNGKey(1))
    pred2 = jax.random.normal(k3, (B2, T2, Q), dtype=jnp.float32)
    gt2 = jax.random.normal(k4, (B2, T2, Q), dtype=jnp.float32)
    out2 = jax.block_until_ready(
        quantile_loss(pred2, gt2, quantiles, row_block=8, lane_block=384))
    ref2 = _reference(pred2, gt2, quantiles)
    assert jnp.allclose(out2, ref2, rtol=1e-5, atol=1e-5), (out2, ref2)

    # Test 3: bf16 inputs accepted without wrapper upcast (f32 accumulation).
    B3, T3 = 4, 100
    k5, k6 = jax.random.split(jax.random.PRNGKey(2))
    pred3 = jax.random.normal(k5, (B3, T3, Q), dtype=jnp.float32).astype(jnp.bfloat16)
    gt3 = jax.random.normal(k6, (B3, T3, Q), dtype=jnp.float32).astype(jnp.bfloat16)
    out3 = jax.block_until_ready(quantile_loss(pred3, gt3, quantiles))
    ref3 = _reference(pred3.astype(jnp.float32), gt3.astype(jnp.float32), quantiles)
    assert jnp.allclose(out3, ref3, rtol=1e-5, atol=1e-5), (out3, ref3)

    print("KERNEL_OK")
</pallas_src>

<mosaic_0001>
module attributes {stable_mosaic.version = 11 : i64} {
  func.func @kernel(%arg0: i32, %arg1: i32, %arg2: memref<1x24xf32, #tpu.memory_space<vmem>>, %arg3: memref<2x24xf32, #tpu.memory_space<vmem>>, %arg4: memref<2x24xf32, #tpu.memory_space<vmem>>, %arg5: memref<1x8x128xf32, #tpu.memory_space<vmem>>, %arg6: memref<1x24xf32, #tpu.memory_space<vmem>>, %arg7: memref<1x24xf32, #tpu.memory_space<vmem>>) attributes {dimension_semantics = [#tpu.dimension_semantics<parallel>, #tpu.dimension_semantics<arbitrary>], iteration_bounds = array<i64: 1, 1>, scalar_prefetch = 0 : i64, scratch_operands = 2 : i64, tpu.core_type = #tpu.core_type<tc>, window_params = [{pipeline_mode = #tpu.pipeline_mode<synchronous>, transform_indices = @transform_0, window_bounds = array<i64: 1, 24>}, {transform_indices = @transform_1, window_bounds = array<i64: 2, 24>}, {transform_indices = @transform_2, window_bounds = array<i64: 2, 24>}, {transform_indices = @transform_3, window_bounds = array<i64: 1, 8, 128>}]} {
    %c0_i32 = arith.constant 0 : i32
    %0 = arith.cmpi eq, %arg1, %c0_i32 : i32
    %1 = arith.extui %0 : i1 to i32
    %c0_i32_0 = arith.constant 0 : i32
    %2 = arith.cmpi ne, %1, %c0_i32_0 : i32
    scf.if %2 {
      %cst_16 = arith.constant 0.000000e+00 : f32
      %21 = vector.broadcast %cst_16 : f32 to vector<1x24xf32>
      %c0_17 = arith.constant 0 : index
      %c0_18 = arith.constant 0 : index
      %22 = vector.load %arg6[%c0_17, %c0_18] : memref<1x24xf32, #tpu.memory_space<vmem>>, vector<1x24xf32>
      tpu.vector_store %arg6[%c0_17, %c0_18], %21 {strides = array<i32>} : memref<1x24xf32, #tpu.memory_space<vmem>>, vector<1x24xf32>,
      %cst_19 = arith.constant 0.000000e+00 : f32
      %23 = vector.broadcast %cst_19 : f32 to vector<1x24xf32>
      %c0_20 = arith.constant 0 : index
      %c0_21 = arith.constant 0 : index
      %24 = vector.load %arg7[%c0_20, %c0_21] : memref<1x24xf32, #tpu.memory_space<vmem>>, vector<1x24xf32>
      tpu.vector_store %arg7[%c0_20, %c0_21], %23 {strides = array<i32>} : memref<1x24xf32, #tpu.memory_space<vmem>>, vector<1x24xf32>,
    } else {
    }
    %c0 = arith.constant 0 : index
    %c0_1 = arith.constant 0 : index
    %3 = vector.load %arg3[%c0, %c0_1] : memref<2x24xf32, #tpu.memory_space<vmem>>, vector<2x24xf32>
    %c0_2 = arith.constant 0 : index
    %c0_3 = arith.constant 0 : index
    %4 = vector.load %arg4[%c0_2, %c0_3] : memref<2x24xf32, #tpu.memory_space<vmem>>, vector<2x24xf32>
    %5 = arith.subf %4, %3 : vector<2x24xf32>
    %c0_4 = arith.constant 0 : index
    %c0_5 = arith.constant 0 : index
    %6 = vector.load %arg6[%c0_4, %c0_5] : memref<1x24xf32, #tpu.memory_space<vmem>>, vector<1x24xf32>
    %cst = arith.constant dense<0.000000e+00> : vector<24xf32>
    %7 = vector.multi_reduction <add>, %5, %cst [0] : vector<2x24xf32> to vector<24xf32>
    %8 = vector.shape_cast %7 : vector<24xf32> to vector<1x24xf32>
    %9 = arith.addf %6, %8 : vector<1x24xf32>
    %c0_6 = arith.constant 0 : index
    %c0_7 = arith.constant 0 : index
    %10 = vector.load %arg6[%c0_6, %c0_7] : memref<1x24xf32, #tpu.memory_space<vmem>>, vector<1x24xf32>
    tpu.vector_store %arg6[%c0_6, %c0_7], %9 {strides = array<i32>} : memref<1x24xf32, #tpu.memory_space<vmem>>, vector<1x24xf32>,
    %c0_8 = arith.constant 0 : index
    %c0_9 = arith.constant 0 : index
    %11 = vector.load %arg7[%c0_8, %c0_9] : memref<1x24xf32, #tpu.memory_space<vmem>>, vector<1x24xf32>
    %cst_10 = arith.constant 0.000000e+00 : f32
    %12 = vector.broadcast %cst_10 : f32 to vector<2x24xf32>
    %13 = arith.minimumf %5, %12 : vector<2x24xf32>
    %cst_11 = arith.constant dense<0.000000e+00> : vector<24xf32>
    %14 = vector.multi_reduction <add>, %13, %cst_11 [0] : vector<2x24xf32> to vector<24xf32>
    %15 = vector.shape_cast %14 : vector<24xf32> to vector<1x24xf32>
    %16 = arith.addf %11, %15 : vector<1x24xf32>
    %c0_12 = arith.constant 0 : index
    %c0_13 = arith.constant 0 : index
    %17 = vector.load %arg7[%c0_12, %c0_13] : memref<1x24xf32, #tpu.memory_space<vmem>>, vector<1x24xf32>
    tpu.vector_store %arg7[%c0_12, %c0_13], %16 {strides = array<i32>} : memref<1x24xf32, #tpu.memory_space<vmem>>, vector<1x24xf32>,
    %c0_i32_14 = arith.constant 0 : i32
    %18 = arith.cmpi eq, %arg1, %c0_i32_14 : i32
    %19 = arith.extui %18 : i1 to i32
    %c0_i32_15 = arith.constant 0 : i32
    %20 = arith.cmpi ne, %19, %c0_i32_15 : i32
    scf.if %20 {
      %c0_16 = arith.constant 0 : index
      %c0_17 = arith.constant 0 : index
      %21 = vector.load %arg2[%c0_16, %c0_17] : memref<1x24xf32, #tpu.memory_space<vmem>>, vector<1x24xf32>
      %c0_18 = arith.constant 0 : index
      %c0_19 = arith.constant 0 : index
      %22 = vector.load %arg6[%c0_18, %c0_19] : memref<1x24xf32, #tpu.memory_space<vmem>>, vector<1x24xf32>
      %23 = arith.mulf %21, %22 : vector<1x24xf32>
      %c0_20 = arith.constant 0 : index
      %c0_21 = arith.constant 0 : index
      %24 = vector.load %arg7[%c0_20, %c0_21] : memref<1x24xf32, #tpu.memory_space<vmem>>, vector<1x24xf32>
      %25 = arith.subf %23, %24 : vector<1x24xf32>
      %26 = vector.shape_cast %25 : vector<1x24xf32> to vector<1x1x24xf32>
      %cst_22 = arith.constant dense<0.000000e+00> : vector<1xf32>
      %27 = vector.multi_reduction <add>, %26, %cst_22 [1, 2] : vector<1x1x24xf32> to vector<1xf32>
      %28 = vector.shape_cast %27 : vector<1xf32> to vector<1x1x1xf32>
      %29 = vector.extract %28[0, 0, 0] : f32 from vector<1x1x1xf32>
      %30 = vector.broadcast %29 : f32 to vector<1x8x128xf32>
      %c0_23 = arith.constant 0 : index
      %c0_24 = arith.constant 0 : index
      %c0_25 = arith.constant 0 : index
      %31 = vector.load %arg5[%c0_23, %c0_24, %c0_25] : memref<1x8x128xf32, #tpu.memory_space<vmem>>, vector<1x8x128xf32>
      tpu.vector_store %arg5[%c0_23, %c0_24, %c0_25], %30 {strides = array<i32>} : memref<1x8x128xf32, #tpu.memory_space<vmem>>, vector<1x8x128xf32>,
    } else {
    }
    return
  }
  func.func @transform_0(%arg0: i32, %arg1: i32) -> (i32, i32) {
    %c0_i32 = arith.constant 0 : i32
    %c0_i32_0 = arith.constant 0 : i32
    %c0_i32_1 = arith.constant 0 : i32
    return %c0_i32, %c0_i32_0 : i32, i32
  }
  func.func @transform_1(%arg0: i32, %arg1: i32) -> (i32, i32) {
    %c0_i32 = arith.constant 0 : i32
    return %arg0, %arg1 : i32, i32
  }
  func.func @transform_2(%arg0: i32, %arg1: i32) -> (i32, i32) {
    %c0_i32 = arith.constant 0 : i32
    return %arg0, %arg1 : i32, i32
  }
  func.func @transform_3(%arg0: i32, %arg1: i32) -> (i32, i32, i32) {
    %c0_i32 = arith.constant 0 : i32
    %c0_i32_0 = arith.constant 0 : i32
    %c0_i32_1 = arith.constant 0 : i32
    return %arg0, %c0_i32, %c0_i32_0 : i32, i32, i32
  }
}

</mosaic_0001>

<bundles_post_ra>
// kernel: quantile_loss.1
= control target key start
LH: loop header
LB: loop body
LE: loop exit
PB: predicated region body
PF: predicated region fallthrough
CT: control target
= control target key end

     0   :  { %vm18_vm0 = vcmask 188416   ;;  %vm25_vm1 = vcmask 189440   ;;  %v74_v0 = vmov 0.0   ;;  %s112_s1 = inlined_call_operand.vmem [shape: f32[2,24], index: 1, kind: input, shape index: {}]   ;;  %s113_s2 = inlined_call_operand.vmem [shape: f32[2,24], index: 2, kind: input, shape index: {}]   ;;  %s114_s0 = inlined_call_operand.vmem [shape: f32[1,24], index: 0, kind: input, shape index: {}]   ;;  %s115_s3 = inlined_call_operand.vmem [shape: f32[1,8,128], index: 3, kind: output, shape index: {}]  }
   0x1   :  { %19 = vst.msk [vmem:[#allocation2] sm:$0x1] %vm18_vm0, %v74_v0  ;;  %v21_v1 = vld [vmem:[%s112_s1] sm:$0x3] }
   0x2   :  { %v22_v2 = vld [vmem:[%s113_s2] sm:$0x3]  ;;  %20 = vst.msk [vmem:[#allocation3] sm:$0x1] %vm18_vm0, %v74_v0 }
   0x3   :  { %v23_v3 = vsub.f32 %v22_v2, %v21_v1  ;;  %v50_v23 = vld [vmem:[%s114_s0] sm:$0x1] }
   0x5   :  { %v26_v4 = vsel %vm25_vm1, %v23_v3, 0.0  ;;  %v37_v5 = vmin.f32 %v23_v3, 0.0 }
   0x6   :  { %v27_v6 = vrot.slane %v26_v4, 4 }
   0x7   :  { %v38_v7 = vsel %vm25_vm1, %v37_v5, 0.0 }
   0x8   :  { %v28_v8 = vadd.f32 %v27_v6, %v26_v4  ;;  %v39_v9 = vrot.slane %v38_v7, 4  ;;  %v24_v16 = vld [vmem:[#allocation2] sm:$0x1] }
   0x9   :  { %v36_v19 = vld [vmem:[#allocation3] sm:$0x1] }
   0xa   :  { %v29_v10 = vrot.slane %v28_v8, 2  ;;  %v40_v11 = vadd.f32 %v39_v9, %v38_v7 }
   0xc   :  { %v30_v12 = vadd.f32 %v29_v10, %v28_v8  ;;  %v41_v13 = vrot.slane %v40_v11, 2 }
   0xe   :  { %v31_v14 = vrot.slane %v30_v12, 1  ;;  %v42_v15 = vadd.f32 %v41_v13, %v40_v11 }
  0x10   :  { %v32_v17 = vadd.f32 %v31_v14, %v30_v12  ;;  %v43_v18 = vrot.slane %v42_v15, 1 }
  0x12   :  { %v33_v20 = vadd.f32 %v32_v17, %v24_v16  ;;  %v44_v21 = vadd.f32 %v43_v18, %v42_v15 }
  0x14   :  { %35 = vst.msk [vmem:[#allocation2] sm:$0x1] %vm18_vm0, %v33_v20  ;;  %v45_v22 = vadd.f32 %v44_v21, %v36_v19 }
  0x16   :  { %46 = vst.msk [vmem:[#allocation3] sm:$0x1] %vm18_vm0, %v45_v22 }
  0x1b   :  { %v51_v24 = vld [vmem:[#allocation2] sm:$0x1] }
  0x1c   :  { %v52_v25 = vmul.f32 %v51_v24, %v50_v23 }
  0x1d   :  { %v53_v26 = vld [vmem:[#allocation3] sm:$0x1] }
  0x1e   :  { %v54_v27 = vsub.f32 %v52_v25, %v53_v26 }
  0x20   :  { %v55_v28 = vsel %vm18_vm0, %v54_v27, 0.0 }
  0x21   :  { %56 = vadd.xlane.f32.xlu0 %v55_v28 }
  0x94   :  { %v57_v29 = vpop.xlane.xlu0 %56 }
  0x95   :  { %v58_v30 = vrot.slane %v57_v29, 4 }
  0x97   :  { %v59_v31 = vadd.f32 %v58_v30, %v57_v29 }
  0x99   :  { %v60_v32 = vrot.slane %v59_v31, 2 }
  0x9b   :  { %v61_v33 = vadd.f32 %v60_v32, %v59_v31 }
  0x9d   :  { %v62_v34 = vrot.slane %v61_v33, 1 }
  0x9f   :  { %v63_v35 = vadd.f32 %v62_v34, %v61_v33 }
  0xa1   :  { %71 = vpush %v63_v35 }
  0xd2   :  { %s72_s16 = spop %71 }
  0xd3   :  { %v65_v36 = vstv %s72_s16 }
  0xd4   :  { %66 = vst [vmem:[%s115_s3] sm:$0xff] %v65_v36 }

</bundles_post_ra>
